<compile_context>
chip_gen: v5e
topology: v5e:2x2
jax: 0.10.0
libtpu: 0.0.40
codegen_flags: <defaults>
</compile_context>

<pallas_src>
import functools

import jax
import jax.numpy as jnp
import numpy as np
from jax.experimental import pallas as pl
from jax.experimental.pallas import tpu as pltpu

# Scoped-VMEM cap passed to Mosaic: safe on v5e/v6e (128 MiB physical) and
# v7x (64 MiB physical).  The tile heuristic targets a smaller budget so the
# double-buffered pipeline always has headroom.
_VMEM_LIMIT_BYTES = 48 * 1024 * 1024
_VMEM_BUDGET_BYTES = 36 * 1024 * 1024


def _bitrev(m, nbits):
    r = 0
    for _ in range(nbits):
        r = (r << 1) | (m & 1)
        m >>= 1
    return r


def _round_up(v, m):
    return -(-v // m) * m


def _pick_batch_tile(B, D, F, last_level_width):
    """Largest batch tile whose per-tile working set fits the VMEM budget."""
    if B <= 8:
        return B                                  # single full-extent block
    f_pad = _round_up(F, 128)
    d_pad = _round_up(D, 128)
    lw_pad = _round_up(max(last_level_width, 1), 128)
    w_bytes = _round_up(D, 8) * f_pad * 4         # resident weight tile (pass 1)
    p1_row = (2 * d_pad + 2 * f_pad) * 4          # x dbuf in + logits dbuf out
    p2_row = (4 * f_pad + 3 * lw_pad) * 4         # logits dbuf in + z/sig + concat temps
    per_row = max(p1_row, p2_row)
    tb = 8
    for cand in (16, 32, 64, 128, 256, 512, 1024):
        if cand > _round_up(B, 8):
            break
        if w_bytes + cand * per_row <= _VMEM_BUDGET_BYTES:
            tb = cand
    return tb


# ---------------------------------------------------------------------------
# Pass 1: linear matmul (done once) + per-core column sum / sum-of-squares.
# Grid = (n_core "parallel", tiles-per-core "arbitrary").  Each core owns its
# own [1,1,F] partial-sum output rows (accumulated in VMEM across the
# arbitrary axis); the whole-batch combine happens in the wrapper.
# Statistics are of lin = x @ W (bias-free: training-mode BN cancels bias).
# ---------------------------------------------------------------------------
def _ngt_stats_kernel(x_ref, w_ref,                       # inputs
                      lin_ref, sum_ref, sq_ref,           # outputs
                      *, batch_rows, tile_rows, tiles_per_core, masked):
    j = pl.program_id(1)

    @pl.when(j == 0)
    def _init():
        sum_ref[...] = jnp.zeros_like(sum_ref)
        sq_ref[...] = jnp.zeros_like(sq_ref)

    lin = jnp.dot(x_ref[...], w_ref[...], preferred_element_type=jnp.float32)

    if masked:
        # zero-padded batch rows must not pollute the BN statistics
        start = (pl.program_id(0) * tiles_per_core + j) * tile_rows
        rows = jax.lax.broadcasted_iota(jnp.int32, lin.shape, 0) + start
        valid = (rows < batch_rows).astype(jnp.float32)
        s_term = lin * valid
    else:
        s_term = lin

    sum_ref[...] += jnp.sum(s_term, axis=0, keepdims=True)[None]
    sq_ref[...] += jnp.sum(lin * s_term, axis=0, keepdims=True)[None]

    lin_ref[...] = lin


# ---------------------------------------------------------------------------
# Pass 2: fused affine (BN + per-level sigmoid scale) + lane-dense soft tree.
# Columns were pre-permuted (level-major, bit-reversed forks, tree minor), so
# each level's decisions are one contiguous lane slice and the path
# probabilities double with a single concat + multiply per level.
# ---------------------------------------------------------------------------
def _ngt_apply_kernel(lin_ref, a_ref, c_ref, out_ref, *,
                      tree_depth, num_trees, epsilon):
    z = lin_ref[...] * a_ref[...] + c_ref[...]        # fused BN + scale (1 FMA)
    sig = 0.5 * jnp.tanh(0.5 * z) + 0.5               # stable sigmoid, EUP-routed

    rows = z.shape[0]
    flat = jnp.ones((rows, num_trees), jnp.float32)
    off = 0
    for i in range(tree_depth - 1):
        width = num_trees * (2 ** i)
        d = sig[:, off:off + width]
        flat = jnp.concatenate([flat * (1.0 - d), flat * d], axis=-1)
        off += width
    d_last = sig[:, off:]                              # [rows, T*2^(depth-1)]

    # lane-dense result: transpose the small score matrix (second-minor dim is
    # the narrow tree width) and reduce over sublanes -> a [1, rows] row.
    scores_t = jnp.transpose(flat * d_last)            # [W_last, rows]
    prob1 = jnp.sum(scores_t, axis=0, keepdims=True) * (1.0 / num_trees)
    capped = (1.0 - 2.0 * epsilon) * prob1 + epsilon   # [1, rows]
    out_ref[...] = capped.reshape(1, 1, rows).astype(out_ref.dtype)


# ---------------------------------------------------------------------------
# Wrapper
# ---------------------------------------------------------------------------
def ngt_forward(x, weight_t, bias, gamma, beta, *, tree_depth, num_trees,
                bn_eps=1e-5, epsilon=1e-5):
    """x: [B, D]; weight_t: [D, F]; bias/gamma/beta: [1, F], F = num_trees*(2^depth-1).

    Note: `bias` is accepted for API parity but has no effect on the output —
    training-mode BatchNorm right after the Linear cancels it exactly.
    """
    del bias  # exactly cancelled by training-mode BatchNorm
    B, D = x.shape
    num_forks = 2 ** tree_depth - 1
    F = num_trees * num_forks
    assert weight_t.shape == (D, F)
    f32 = jnp.float32

    # Column permutation: level-major blocks; within a level the fork index is
    # bit-reversed and the tree index is minor, so each level's decisions form
    # one contiguous lane slice and path expansion is a pure concat.
    perm = np.zeros((F,), dtype=np.int32)
    scale_perm = np.zeros((1, F), dtype=np.float32)
    n = 0
    for i in range(tree_depth):
        s = 1.0 / (2.0 ** (0.5 * (tree_depth - i - 1)))
        for m in range(2 ** i):
            p = _bitrev(m, i)
            for t in range(num_trees):
                perm[n] = t * num_forks + (2 ** i - 1) + p
                scale_perm[0, n] = s
                n += 1

    w_p = jnp.asarray(weight_t)[:, perm].astype(f32)
    scale = jnp.asarray(scale_perm)
    g_s = jnp.asarray(gamma)[:, perm].astype(f32) * scale     # scale * gamma
    bt_s = jnp.asarray(beta)[:, perm].astype(f32) * scale     # scale * beta

    last_level_width = num_trees * (2 ** (tree_depth - 1))
    TB = _pick_batch_tile(B, D, F, last_level_width)
    B_pad = _round_up(B, TB)
    n_bt = B_pad // TB
    masked = B_pad != B
    x_in = x if not masked else jnp.zeros((B_pad, D), x.dtype).at[:B].set(x)

    # Megacore split of the statistics pass (leading "parallel" axis; 2x on
    # v7x, harmless serialized halves on single-TC v5e/v6e).
    n_core = 2 if (n_bt >= 2 and n_bt % 2 == 0) else 1
    npc = n_bt // n_core

    # ---- pass 1: matmul once, cache logits, per-core column moments ----
    stats_kernel = functools.partial(
        _ngt_stats_kernel, batch_rows=B, tile_rows=TB,
        tiles_per_core=npc, masked=masked)
    lin_arr, psum, psq = pl.pallas_call(
        stats_kernel,
        out_shape=(jax.ShapeDtypeStruct((B_pad, F), f32),
                   jax.ShapeDtypeStruct((n_core, 1, F), f32),
                   jax.ShapeDtypeStruct((n_core, 1, F), f32)),
        grid=(n_core, npc),
        in_specs=[pl.BlockSpec((TB, D), lambda c, j: (c * npc + j, 0)),
                  pl.BlockSpec((D, F), lambda c, j: (0, 0))],
        out_specs=(pl.BlockSpec((TB, F), lambda c, j: (c * npc + j, 0)),
                   pl.BlockSpec((1, 1, F), lambda c, j: (c, 0, 0)),
                   pl.BlockSpec((1, 1, F), lambda c, j: (c, 0, 0))),
        compiler_params=pltpu.CompilerParams(
            dimension_semantics=("parallel", "arbitrary"),
            vmem_limit_bytes=_VMEM_LIMIT_BYTES),
    )(x_in, w_p)

    # ---- tiny whole-batch combine + fused affine coefficients ([1,F]) ----
    inv_b = 1.0 / float(B)
    mean_lin = jnp.sum(psum, axis=0) * inv_b                     # [1, F]
    var = jnp.maximum(jnp.sum(psq, axis=0) * inv_b - mean_lin * mean_lin, 0.0)
    rstd = jax.lax.rsqrt(var + bn_eps)
    a_vec = g_s * rstd                                           # scale*gamma*rstd
    c_vec = bt_s - g_s * mean_lin * rstd                         # scale*beta - a*mean

    # ---- pass 2: affine + sigmoid + soft tree on the cached logits ----
    apply_kernel = functools.partial(
        _ngt_apply_kernel, tree_depth=tree_depth, num_trees=num_trees,
        epsilon=epsilon)
    out_rows = pl.pallas_call(
        apply_kernel,
        out_shape=jax.ShapeDtypeStruct((n_bt, 1, TB), f32),
        grid=(n_bt,),
        in_specs=[pl.BlockSpec((TB, F), lambda i: (i, 0)),
                  pl.BlockSpec((1, F), lambda i: (0, 0)),
                  pl.BlockSpec((1, F), lambda i: (0, 0))],
        out_specs=pl.BlockSpec((1, 1, TB), lambda i: (i, 0, 0)),
        compiler_params=pltpu.CompilerParams(
            dimension_semantics=("parallel",),
            vmem_limit_bytes=_VMEM_LIMIT_BYTES),
    )(lin_arr, a_vec, c_vec)

    return out_rows.reshape(B_pad, 1)[:B]


# ---------------------------------------------------------------------------
# Pure-JAX reference (mirrors the PyTorch forward, training-mode BN)
# ---------------------------------------------------------------------------
def ngt_reference(x, weight_t, bias, gamma, beta, *, tree_depth, num_trees,
                  bn_eps=1e-5, epsilon=1e-5):
    num_forks = 2 ** tree_depth - 1
    logits = x @ weight_t + bias
    mean = jnp.mean(logits, axis=0, keepdims=True)
    var = jnp.mean((logits - mean) ** 2, axis=0, keepdims=True)
    norms = gamma * (logits - mean) / jnp.sqrt(var + bn_eps) + beta
    reshapes = norms.reshape(-1, num_trees, num_forks)
    trees_flat = jnp.ones_like(reshapes[:, :, 0:1])
    j = 0
    trees = None
    for i in range(tree_depth):
        scale = 1.0 / 2 ** (0.5 * (tree_depth - i - 1))
        decisions1 = jax.nn.sigmoid(scale * reshapes[:, :, j:j + 2 ** i])
        decisions = jnp.stack([1.0 - decisions1, decisions1], axis=3)
        trees = trees_flat[:, :, :, None] * decisions
        width = trees_flat.shape[2] * 2
        trees_flat = trees.reshape(-1, num_trees, width)
        j += 2 ** i
    probabilities = jnp.sum(trees, axis=2)
    probabilities1 = probabilities[:, :, 1:2]
    probability1 = jnp.mean(probabilities1, axis=1)
    return (1.0 - 2 * epsilon) * probability1 + epsilon


# ---------------------------------------------------------------------------
if __name__ == "__main__":
    B = 8
    NUM_INPUTS = 32
    TREE_DEPTH = 3
    NUM_TREES = 2
    NUM_FORKS = 2 ** TREE_DEPTH - 1
    F = NUM_TREES * NUM_FORKS

    key = jax.random.PRNGKey(0)
    kx, kw, kb, kx2 = jax.random.split(key, 4)

    x = jax.random.normal(kx, (B, NUM_INPUTS), dtype=jnp.float32)

    # Deterministic parameter init (PyTorch-Linear-style uniform bounds).
    bound = 1.0 / np.sqrt(NUM_INPUTS)
    weight_t = jax.random.uniform(kw, (NUM_INPUTS, F), jnp.float32, -bound, bound)
    bias = jax.random.uniform(kb, (1, F), jnp.float32, -bound, bound)
    gamma = jnp.ones((1, F), jnp.float32)   # BatchNorm1d affine weight
    beta = jnp.zeros((1, F), jnp.float32)   # BatchNorm1d affine bias

    out = ngt_forward(x, weight_t, bias, gamma, beta,
                      tree_depth=TREE_DEPTH, num_trees=NUM_TREES)
    out = jax.block_until_ready(out)
    ref = ngt_reference(x, weight_t, bias, gamma, beta,
                        tree_depth=TREE_DEPTH, num_trees=NUM_TREES)
    assert out.shape == (B, 1), out.shape
    np.testing.assert_allclose(np.asarray(out), np.asarray(ref),
                               rtol=1e-4, atol=1e-5)

    # Second check: awkward batch size exercises the padding/masked-statistics
    # path and the multi-tile (megacore-split) statistics pass.
    B2 = 20
    x2 = jax.random.normal(kx2, (B2, NUM_INPUTS), dtype=jnp.float32)
    out2 = jax.block_until_ready(
        ngt_forward(x2, weight_t, bias, gamma, beta,
                    tree_depth=TREE_DEPTH, num_trees=NUM_TREES))
    ref2 = ngt_reference(x2, weight_t, bias, gamma, beta,
                         tree_depth=TREE_DEPTH, num_trees=NUM_TREES)
    assert out2.shape == (B2, 1), out2.shape
    np.testing.assert_allclose(np.asarray(out2), np.asarray(ref2),
                               rtol=1e-4, atol=1e-5)

    print("KERNEL_OK")
</pallas_src>

<mosaic_0001>
module attributes {stable_mosaic.version = 11 : i64} {
  func.func @_ngt_stats_kernel(%arg0: i32, %arg1: i32, %arg2: memref<8x32xf32, #tpu.memory_space<vmem>>, %arg3: memref<32x14xf32, #tpu.memory_space<vmem>>, %arg4: memref<8x14xf32, #tpu.memory_space<vmem>>, %arg5: memref<1x1x14xf32, #tpu.memory_space<vmem>>, %arg6: memref<1x1x14xf32, #tpu.memory_space<vmem>>) attributes {dimension_semantics = [#tpu.dimension_semantics<parallel>, #tpu.dimension_semantics<arbitrary>], iteration_bounds = array<i64: 1, 1>, scalar_prefetch = 0 : i64, scratch_operands = 0 : i64, tpu.core_type = #tpu.core_type<tc>, window_params = [{transform_indices = @transform_0, window_bounds = array<i64: 8, 32>}, {pipeline_mode = #tpu.pipeline_mode<synchronous>, transform_indices = @transform_1, window_bounds = array<i64: 32, 14>}, {transform_indices = @transform_2, window_bounds = array<i64: 8, 14>}, {transform_indices = @transform_3, window_bounds = array<i64: 1, 1, 14>}, {transform_indices = @transform_4, window_bounds = array<i64: 1, 1, 14>}]} {
    %c0_i32 = arith.constant 0 : i32
    %0 = arith.cmpi eq, %arg1, %c0_i32 : i32
    %1 = arith.extui %0 : i1 to i32
    %c0_i32_0 = arith.constant 0 : i32
    %2 = arith.cmpi ne, %1, %c0_i32_0 : i32
    scf.if %2 {
      %cst_20 = arith.constant 0.000000e+00 : f32
      %20 = vector.broadcast %cst_20 : f32 to vector<1x1x14xf32>
      %c0_21 = arith.constant 0 : index
      %c0_22 = arith.constant 0 : index
      %c0_23 = arith.constant 0 : index
      %21 = vector.load %arg5[%c0_21, %c0_22, %c0_23] : memref<1x1x14xf32, #tpu.memory_space<vmem>>, vector<1x1x14xf32>
      tpu.vector_store %arg5[%c0_21, %c0_22, %c0_23], %20 {strides = array<i32>} : memref<1x1x14xf32, #tpu.memory_space<vmem>>, vector<1x1x14xf32>,
      %cst_24 = arith.constant 0.000000e+00 : f32
      %22 = vector.broadcast %cst_24 : f32 to vector<1x1x14xf32>
      %c0_25 = arith.constant 0 : index
      %c0_26 = arith.constant 0 : index
      %c0_27 = arith.constant 0 : index
      %23 = vector.load %arg6[%c0_25, %c0_26, %c0_27] : memref<1x1x14xf32, #tpu.memory_space<vmem>>, vector<1x1x14xf32>
      tpu.vector_store %arg6[%c0_25, %c0_26, %c0_27], %22 {strides = array<i32>} : memref<1x1x14xf32, #tpu.memory_space<vmem>>, vector<1x1x14xf32>,
    } else {
    }
    %c0 = arith.constant 0 : index
    %c0_1 = arith.constant 0 : index
    %3 = vector.load %arg2[%c0, %c0_1] : memref<8x32xf32, #tpu.memory_space<vmem>>, vector<8x32xf32>
    %c0_2 = arith.constant 0 : index
    %c0_3 = arith.constant 0 : index
    %4 = vector.load %arg3[%c0_2, %c0_3] : memref<32x14xf32, #tpu.memory_space<vmem>>, vector<32x14xf32>
    %cst = arith.constant dense<0.000000e+00> : vector<8x14xf32>
    %5 = tpu.matmul %3, %4, %cst {dimension_numbers = #tpu.dot_dimension_numbers<[1], [0], [0], [1], [0, 0, 1, 1], [], []>} : vector<8x32xf32>, vector<32x14xf32>, vector<8x14xf32> -> vector<8x14xf32>
    %c0_4 = arith.constant 0 : index
    %c0_5 = arith.constant 0 : index
    %c0_6 = arith.constant 0 : index
    %6 = vector.load %arg5[%c0_4, %c0_5, %c0_6] : memref<1x1x14xf32, #tpu.memory_space<vmem>>, vector<1x1x14xf32>
    %cst_7 = arith.constant dense<0.000000e+00> : vector<14xf32>
    %7 = vector.multi_reduction <add>, %5, %cst_7 [0] : vector<8x14xf32> to vector<14xf32>
    %8 = vector.shape_cast %7 : vector<14xf32> to vector<1x14xf32>
    %9 = vector.shape_cast %8 : vector<1x14xf32> to vector<1x1x14xf32>
    %10 = arith.addf %6, %9 : vector<1x1x14xf32>
    %c0_8 = arith.constant 0 : index
    %c0_9 = arith.constant 0 : index
    %c0_10 = arith.constant 0 : index
    %11 = vector.load %arg5[%c0_8, %c0_9, %c0_10] : memref<1x1x14xf32, #tpu.memory_space<vmem>>, vector<1x1x14xf32>
    tpu.vector_store %arg5[%c0_8, %c0_9, %c0_10], %10 {strides = array<i32>} : memref<1x1x14xf32, #tpu.memory_space<vmem>>, vector<1x1x14xf32>,
    %c0_11 = arith.constant 0 : index
    %c0_12 = arith.constant 0 : index
    %c0_13 = arith.constant 0 : index
    %12 = vector.load %arg6[%c0_11, %c0_12, %c0_13] : memref<1x1x14xf32, #tpu.memory_space<vmem>>, vector<1x1x14xf32>
    %13 = arith.mulf %5, %5 : vector<8x14xf32>
    %cst_14 = arith.constant dense<0.000000e+00> : vector<14xf32>
    %14 = vector.multi_reduction <add>, %13, %cst_14 [0] : vector<8x14xf32> to vector<14xf32>
    %15 = vector.shape_cast %14 : vector<14xf32> to vector<1x14xf32>
    %16 = vector.shape_cast %15 : vector<1x14xf32> to vector<1x1x14xf32>
    %17 = arith.addf %12, %16 : vector<1x1x14xf32>
    %c0_15 = arith.constant 0 : index
    %c0_16 = arith.constant 0 : index
    %c0_17 = arith.constant 0 : index
    %18 = vector.load %arg6[%c0_15, %c0_16, %c0_17] : memref<1x1x14xf32, #tpu.memory_space<vmem>>, vector<1x1x14xf32>
    tpu.vector_store %arg6[%c0_15, %c0_16, %c0_17], %17 {strides = array<i32>} : memref<1x1x14xf32, #tpu.memory_space<vmem>>, vector<1x1x14xf32>,
    %c0_18 = arith.constant 0 : index
    %c0_19 = arith.constant 0 : index
    %19 = vector.load %arg4[%c0_18, %c0_19] : memref<8x14xf32, #tpu.memory_space<vmem>>, vector<8x14xf32>
    tpu.vector_store %arg4[%c0_18, %c0_19], %5 {strides = array<i32>} : memref<8x14xf32, #tpu.memory_space<vmem>>, vector<8x14xf32>,
    return
  }
  func.func @transform_0(%arg0: i32, %arg1: i32) -> (i32, i32) {
    %c1_i32 = arith.constant 1 : i32
    %0 = arith.muli %arg0, %c1_i32 : i32
    %1 = arith.addi %0, %arg1 : i32
    %c0_i32 = arith.constant 0 : i32
    %c0_i32_0 = arith.constant 0 : i32
    return %1, %c0_i32 : i32, i32
  }
  func.func @transform_1(%arg0: i32, %arg1: i32) -> (i32, i32) {
    %c0_i32 = arith.constant 0 : i32
    %c0_i32_0 = arith.constant 0 : i32
    %c0_i32_1 = arith.constant 0 : i32
    return %c0_i32, %c0_i32_0 : i32, i32
  }
  func.func @transform_2(%arg0: i32, %arg1: i32) -> (i32, i32) {
    %c1_i32 = arith.constant 1 : i32
    %0 = arith.muli %arg0, %c1_i32 : i32
    %1 = arith.addi %0, %arg1 : i32
    %c0_i32 = arith.constant 0 : i32
    %c0_i32_0 = arith.constant 0 : i32
    return %1, %c0_i32 : i32, i32
  }
  func.func @transform_3(%arg0: i32, %arg1: i32) -> (i32, i32, i32) {
    %c0_i32 = arith.constant 0 : i32
    %c0_i32_0 = arith.constant 0 : i32
    %c0_i32_1 = arith.constant 0 : i32
    return %arg0, %c0_i32, %c0_i32_0 : i32, i32, i32
  }
  func.func @transform_4(%arg0: i32, %arg1: i32) -> (i32, i32, i32) {
    %c0_i32 = arith.constant 0 : i32
    %c0_i32_0 = arith.constant 0 : i32
    %c0_i32_1 = arith.constant 0 : i32
    return %arg0, %c0_i32, %c0_i32_0 : i32, i32, i32
  }
}

</mosaic_0001>

<bundles_post_ra>
// kernel: tpu_custom_call.1
= control target key start
LH: loop header
LB: loop body
LE: loop exit
PB: predicated region body
PF: predicated region fallthrough
CT: control target
= control target key end

     0   :  { %10 = vsyncpa [#allocation3], 0  ;;  %s288_s0 = inlined_call_operand.vmem [shape: f32[8,32], index: 0, kind: input, shape index: {}]   ;;  %s289_s1 = inlined_call_operand.vmem [shape: f32[32,14], index: 1, kind: input, shape index: {}]   ;;  %s290_s2 = inlined_call_operand.hbm [shape: f32[8,14], index: 2, kind: output, shape index: {0}]   ;;  %s291_s3 = inlined_call_operand.hbm [shape: f32[1,1,14], index: 3, kind: output, shape index: {1}]   ;;  %s292_s4 = inlined_call_operand.hbm [shape: f32[1,1,14], index: 4, kind: output, shape index: {2}]  }
   0x1   :  { %v45_v0 = vld [vmem:[%s289_s1 + $0x18] sm:$0xff]  ;;  %v44_v1 = vld [vmem:[%s289_s1 + $0x10] sm:$0xff] }
   0x2   :  { %62 = vmatpush.msra.mxu0 %v45_v0 }
   0x3   :  { %11 = vsyncpa [#allocation5], 0  ;;  %v43_v2 = vld [vmem:[%s289_s1 + $0x8] sm:$0xff]  ;;  %v42_v3 = vld [vmem:[%s289_s1] sm:$0xff]  ;;  %vm46_vm0 = vcmask 261120   ;;  %vm38_vm1 = vcmask 106496  }
   0x4   :  { %63 = vmatpush.msra.mxu0 %v44_v1  ;;  %v41_v4 = vld [vmem:[%s288_s0] sm:$0xff]  ;;  %v231_v5 = vmov 0.0   ;;  %s232_s25 = smov [#allocation2]   ;;  %s104_s1 = sshll.u32 %s290_s2, 4  ;;  %vm71_vm2 = vcmask 113664   ;;  %s105_s1 = int_to_ptr.hbm [resolvable:$true] %s104_s1 }
   0x5   :  { %39 = vst.msk [vmem:[#allocation4] sm:$0x1] %vm38_vm1, %v231_v5  ;;  %s102_s26 = sshll.u32 %s232_s25, 4  ;;  %s233_s0 = smov [#allocation4]   ;;  %s103_s26 = int_to_ptr.vmem [resolvable:$true] %s102_s26 }
   0x6   :  { %64 = vmatpush.msra.mxu0 %v43_v2  ;;  %40 = vst.msk [vmem:[#allocation6] sm:$0x1] %vm38_vm1, %v231_v5  ;;  %s113_s2 = sshll.u32 %s233_s0, 4  ;;  %s115_s5 = sshll.u32 %s291_s3, 4  ;;  %s114_s2 = int_to_ptr.vmem [resolvable:$true] %s113_s2  ;;  %s116_s5 = int_to_ptr.hbm [resolvable:$true] %s115_s5 }
   0x7   :  { %s234_s6 = smov [#allocation6]   ;;  %s126_s10 = sshll.u32 %s292_s4, 4  ;;  %s127_s10 = int_to_ptr.hbm [resolvable:$true] %s126_s10 }
   0x8   :  { %65 = vmatpush.msra.mxu0 %v42_v3  ;;  %s124_s7 = sshll.u32 %s234_s6, 4  ;;  %s125_s7 = int_to_ptr.vmem [resolvable:$true] %s124_s7 }
   0x9   :  { %150 = vmatmul.msk.f32.vlgmr.msra.gmra.mxu0 %vm46_vm0, %v41_v4 }
   0xc   :  { %v70_v19 = vld [vmem:[#allocation4] sm:$0x1] }
   0xd   :  { %v82_v22 = vld [vmem:[#allocation6] sm:$0x1] }
  0x86   :  { %v67_v6 = vpop.f32.mrf.mxu0 }
  0x87   :  { %v72_v7 = vsel %vm71_vm2, %v67_v6, 0.0  ;;  %v83_v8 = vmul.f32 %v67_v6, %v67_v6  ;;  %93 = vst.msk [vmem:[#allocation2] sm:$0xff] %vm71_vm2, %v67_v6 }
  0x88   :  { %v73_v9 = vrot.slane %v72_v7, 4  ;;  %107 = dma.vmem_to_hbm [thread:$0]  %s103_s26, 128, %s105_s1, [#allocation3]  }
  0x89   :  { %v84_v10 = vsel %vm71_vm2, %v83_v8, 0.0 }
  0x8a   :  { %v74_v11 = vadd.f32 %v73_v9, %v72_v7  ;;  %v85_v12 = vrot.slane %v84_v10, 4 }
  0x8c   :  { %v75_v13 = vrot.slane %v74_v11, 2  ;;  %v86_v14 = vadd.f32 %v85_v12, %v84_v10 }
  0x8e   :  { %v76_v15 = vadd.f32 %v75_v13, %v74_v11  ;;  %v87_v16 = vrot.slane %v86_v14, 2 }
  0x90   :  { %v77_v17 = vrot.slane %v76_v15, 1  ;;  %v88_v18 = vadd.f32 %v87_v16, %v86_v14 }
  0x92   :  { %v78_v20 = vadd.f32 %v77_v17, %v76_v15  ;;  %v89_v21 = vrot.slane %v88_v18, 1 }
  0x94   :  { %v90_v23 = vadd.f32 %v89_v21, %v88_v18  ;;  %v79_v24 = vadd.f32 %v78_v20, %v70_v19 }
  0x96   :  { %81 = vst.msk [vmem:[#allocation4] sm:$0x1] %vm38_vm1, %v79_v24  ;;  %v91_v25 = vadd.f32 %v90_v23, %v82_v22 }
  0x97   :  { %118 = dma.vmem_to_hbm [thread:$0]  %s114_s2, 16, %s116_s5, [#allocation5]  }
  0x98   :  { %92 = vst.msk [vmem:[#allocation6] sm:$0x1] %vm38_vm1, %v91_v25 }
  0x99   :  { %129 = dma.vmem_to_hbm [thread:$0]  %s125_s7, 16, %s127_s10, [#allocation5]  }
  0x9a   :  { %227 = dma.done.wait [#allocation3], 128  }
  0x9b   :  { %228 = vsyncadd [#allocation3], 4294967168 }
  0x9c   :  { %229 = dma.done.wait [#allocation5], 32  }
  0x9d   :  { %230 = vsyncadd [#allocation5], 4294967264 }
  0x9e   :  { %142 = vsyncpa [#allocation3], 1 }
  0x9f   :  { %143 = vsyncpa [#allocation5], 1 }

</bundles_post_ra>
